<compile_context>
chip_gen: v7x
topology: tpu7x:2x2x1
jax: 0.10.0
libtpu: 0.0.40
codegen_flags: <defaults>
</compile_context>

<pallas_src>
import functools

import jax
import jax.numpy as jnp
from jax.experimental import pallas as pl
from jax.experimental.pallas import tpu as pltpu


def _round_up(x, m):
    return ((x + m - 1) // m) * m


def _pick_vmem_limit():
    """Generation-aware scoped-VMEM request (v5e/v6e: 128 MiB phys, v7x: 64 MiB)."""
    try:
        phys = int(pltpu.get_tpu_info().vmem_capacity_bytes)
    except Exception:
        phys = 64 * 1024 * 1024                      # conservative fallback
    if phys >= 128 * 1024 * 1024:
        return 96 * 1024 * 1024                      # v5e / v6e
    return max(32 * 1024 * 1024, min(44 * 1024 * 1024, int(phys * 0.68)))


# ----------------------------- kernels ---------------------------------------


def _scores_partials_kernel(z_ref, w1_ref, b1_ref, w2_ref, out_ref, *, n_true):
    """Phase 1: per-tile per-component score sums.

    z_ref: (tn, M, D) native dtype; w1_ref: (D, Hp); b1_ref/w2_ref: (1, Hp).
    out_ref: (8, M) -- row 0 holds this tile's partial sums, rows 1..7 zeros.
    """
    f32 = jnp.float32
    i = pl.program_id(0)
    tn, m, _ = z_ref.shape

    # Hoisted loads (weights are VMEM-resident).
    w1 = w1_ref[...]
    b1 = b1_ref[...]
    w2 = w2_ref[...]

    # Rows past n_true in the last (partial) tile are garbage: mask them out
    # of the batch sum with a select (NOT a multiply -- keeps NaN/Inf out).
    row = jax.lax.broadcasted_iota(jnp.int32, (tn, 1), 0) + i * tn
    in_bounds = row < n_true

    col = jax.lax.broadcasted_iota(jnp.int32, (1, m), 1)
    vals = jnp.zeros((1, m), f32)
    for mm in range(m):
        zm = z_ref[:, mm, :].astype(f32)                               # (tn, D)
        h = jnp.tanh(jnp.dot(zm, w1, preferred_element_type=f32) + b1)  # (tn, Hp)
        s = jnp.sum(h * w2, axis=-1, keepdims=True)                    # (tn, 1)
        s = jnp.where(in_bounds, s, 0.0)
        s11 = jnp.sum(s, axis=0, keepdims=True)                        # (1, 1)
        vals = jnp.where(col == mm, s11, vals)                         # place @ mm

    sub = jax.lax.broadcasted_iota(jnp.int32, (8, m), 0)
    out_ref[...] = jnp.where(sub == 0, jnp.broadcast_to(vals, (8, m)), 0.0)


def _wsum_kernel(beta_ref, z_ref, out_ref):
    """Phase 2: out[n, :] = sum_m beta[m] * z[n, m, :].

    beta_ref: (1, M, 1) f32 (VMEM); z_ref: (tn, M, D) native; out: (tn, D).
    """
    z = z_ref[...].astype(jnp.float32)                 # (tn, M, D)
    beta = beta_ref[...]                               # (1, M, 1)
    out_ref[...] = jnp.sum(z * beta, axis=1).astype(out_ref.dtype)


def _fused_kernel(z_ref, w1_ref, b1_ref, w2_ref, out_ref, *, inv_n):
    """Small-problem fast path: whole z resident, one HBM read of z."""
    f32 = jnp.float32
    _, m, _ = z_ref.shape
    w1 = w1_ref[...]
    b1 = b1_ref[...]
    w2 = w2_ref[...]

    scores = []
    for mm in range(m):
        zm = z_ref[:, mm, :].astype(f32)                                # (N, D)
        h = jnp.tanh(jnp.dot(zm, w1, preferred_element_type=f32) + b1)  # (N, Hp)
        sm = jnp.sum(h * w2, axis=-1, keepdims=True)                    # (N, 1)
        sm = jnp.sum(sm, axis=0, keepdims=True) * inv_n                 # (1, 1) mean
        scores.append(sm)

    mx = scores[0]
    for s in scores[1:]:
        mx = jnp.maximum(mx, s)
    es = [jnp.exp(s - mx) for s in scores]
    denom = es[0]
    for e in es[1:]:
        denom = denom + e
    inv_denom = 1.0 / denom                                             # (1, 1)

    acc = z_ref[:, 0, :].astype(f32) * (es[0] * inv_denom)
    for mm in range(1, m):
        acc = acc + z_ref[:, mm, :].astype(f32) * (es[mm] * inv_denom)
    out_ref[...] = acc.astype(out_ref.dtype)


# ----------------------------- wrapper ----------------------------------------


def component_attention(z, w1, b1, w2, *, tile_n=None, allow_fast_path=True):
    """z: (N, M, D) any float dtype; w1: (D, H) (= Linear1.weight.T);
    b1: (H,) or (1, H); w2: (H,) or (1, H) (= Linear2.weight, no bias).
    Returns (N, D) in z.dtype."""
    N, M, D = z.shape
    H = w1.shape[1]
    Hp = _round_up(H, 128)
    f32 = jnp.float32

    # Only the tiny weights are padded / up-cast (zero-padded H columns
    # contribute tanh(0)*0 = 0 to the score).
    w1p = jnp.pad(w1.astype(f32), ((0, 0), (0, Hp - H)))
    b1p = jnp.pad(b1.astype(f32).reshape(1, H), ((0, 0), (0, Hp - H)))
    w2p = jnp.pad(w2.astype(f32).reshape(1, H), ((0, 0), (0, Hp - H)))

    esize = jnp.dtype(z.dtype).itemsize
    vmem_limit = _pick_vmem_limit()
    weights_bytes = (D * Hp + 2 * Hp) * 4

    # ---- Fast path: whole problem resident in VMEM -> single pass over z. ----
    fused_bytes = (N * M * D * esize        # z block
                   + 3 * N * D * 4          # one f32 component slice + acc + out
                   + N * Hp * 4             # transient h
                   + 2 * weights_bytes)
    fast_budget = min(int(vmem_limit * 0.6), 24 * 1024 * 1024)
    if allow_fast_path and tile_n is None and fused_bytes <= fast_budget:
        return pl.pallas_call(
            functools.partial(_fused_kernel, inv_n=1.0 / N),
            out_shape=jax.ShapeDtypeStruct((N, D), z.dtype),
            grid=(1,),
            in_specs=[
                pl.BlockSpec((N, M, D), lambda i: (0, 0, 0)),
                pl.BlockSpec((D, Hp), lambda i: (0, 0)),
                pl.BlockSpec((1, Hp), lambda i: (0, 0)),
                pl.BlockSpec((1, Hp), lambda i: (0, 0)),
            ],
            out_specs=pl.BlockSpec((N, D), lambda i: (0, 0)),
            compiler_params=pltpu.CompilerParams(
                dimension_semantics=("arbitrary",),
                vmem_limit_bytes=vmem_limit,
            ),
        )(z, w1p, b1p, w2p)

    # ---- Tiled path: two streaming passes over z. ----
    if tile_n is None:
        # Double-buffered native-dtype z block + in-kernel f32 transients.
        per_row_p1 = 2 * M * D * esize + (D + 2 * Hp) * 4
        per_row_p2 = 2 * M * D * esize + M * D * 4 + 3 * D * 4
        per_row = max(per_row_p1, per_row_p2)
        budget = int(vmem_limit * 0.7) - 2 * weights_bytes
        tile_n = budget // per_row if budget > 0 else 8
        # TODO(synk): tile the D axis as a second grid dimension when even an
        #             (8, M, D) block exceeds the VMEM budget.
        tile_n = max(8, min(int(tile_n), 1024))
        tile_n = (tile_n // 8) * 8
    tile_n = int(tile_n)
    if tile_n >= N:
        tile_n = N                      # single block (full batch)
    else:
        tile_n = max(8, (tile_n // 8) * 8)
    num_tiles = pl.cdiv(N, tile_n)

    # ---- Phase 1: per-tile partial score sums (grid "parallel"). ----
    partials = pl.pallas_call(
        functools.partial(_scores_partials_kernel, n_true=N),
        out_shape=jax.ShapeDtypeStruct((num_tiles * 8, M), f32),
        grid=(num_tiles,),
        in_specs=[
            pl.BlockSpec((tile_n, M, D), lambda i: (i, 0, 0)),   # z tiles (native)
            pl.BlockSpec((D, Hp), lambda i: (0, 0)),             # w1 resident
            pl.BlockSpec((1, Hp), lambda i: (0, 0)),             # b1 resident
            pl.BlockSpec((1, Hp), lambda i: (0, 0)),             # w2 resident
        ],
        out_specs=pl.BlockSpec((8, M), lambda i: (i, 0)),        # per-tile partials
        compiler_params=pltpu.CompilerParams(
            dimension_semantics=("parallel",),
            vmem_limit_bytes=vmem_limit,
        ),
    )(z, w1p, b1p, w2p)

    # Tiny epilogue in plain XLA: batch mean + softmax over components.
    w_mean = jnp.sum(partials, axis=0) / jnp.float32(N)          # (M,)
    beta = jax.nn.softmax(w_mean, axis=0).astype(f32).reshape(1, M, 1)

    # ---- Phase 2: weighted sum over components (grid "parallel"). ----
    out = pl.pallas_call(
        _wsum_kernel,
        out_shape=jax.ShapeDtypeStruct((N, D), z.dtype),
        grid=(num_tiles,),
        in_specs=[
            pl.BlockSpec((1, M, 1), lambda i: (0, 0, 0)),        # beta (VMEM)
            pl.BlockSpec((tile_n, M, D), lambda i: (i, 0, 0)),   # z tiles (native)
        ],
        out_specs=pl.BlockSpec((tile_n, D), lambda i: (i, 0)),
        compiler_params=pltpu.CompilerParams(
            dimension_semantics=("parallel",),
            vmem_limit_bytes=vmem_limit,
        ),
    )(beta, z)
    return out


# ----------------------------- reference / demo -------------------------------


def component_attention_ref(z, w1, b1, w2):
    # plain-JAX reference matching the PyTorch forward
    h = jnp.tanh(jnp.einsum("nmd,dh->nmh", z, w1) + b1.reshape(1, 1, -1))
    sc = jnp.sum(h * w2.reshape(1, 1, -1), axis=-1, keepdims=True)   # (N, M, 1)
    w = jnp.mean(sc, axis=0)                                         # (M, 1)
    beta = jax.nn.softmax(w, axis=0)                                 # (M, 1)
    return jnp.sum(beta[None] * z, axis=1)                           # (N, D)


if __name__ == "__main__":
    def init_params(key, in_size, hidden_size):
        k1, kb, k2 = jax.random.split(key, 3)
        bound1 = 1.0 / jnp.sqrt(jnp.float32(in_size))
        bound2 = 1.0 / jnp.sqrt(jnp.float32(hidden_size))
        w1 = jax.random.uniform(k1, (in_size, hidden_size), jnp.float32, -bound1, bound1)
        b1 = jax.random.uniform(kb, (1, hidden_size), jnp.float32, -bound1, bound1)
        w2 = jax.random.uniform(k2, (1, hidden_size), jnp.float32, -bound2, bound2)
        return w1, b1, w2

    root = jax.random.PRNGKey(0)
    kz1, kp1, kz2, kp2 = jax.random.split(root, 4)

    # Config 1: small shapes consistent with the module (batch=2, components=4,
    # in=16, hidden=32).  Exercises the single-pass VMEM-resident fast path.
    N, M, D, H = 2, 4, 16, 32
    w1, b1, w2 = init_params(kp1, D, H)
    z = jax.random.normal(kz1, (N, M, D), jnp.float32)

    out = jax.block_until_ready(component_attention(z, w1, b1, w2))
    ref = component_attention_ref(z, w1, b1, w2)
    assert out.shape == (N, D)
    assert jnp.allclose(out, ref, rtol=1e-4, atol=1e-4), (out, ref)

    # Config 1, forced two-pass tiled path (single full-batch block, grid=1).
    out_t = jax.block_until_ready(component_attention(z, w1, b1, w2, allow_fast_path=False))
    assert jnp.allclose(out_t, ref, rtol=1e-4, atol=1e-4), (out_t, ref)

    # Config 2: exercises multi-tile streaming, a partial last batch tile
    # (37 % 16 != 0), un-padded M=5 / D=40 blocks and H padding (48 -> 128).
    N2, M2, D2, H2 = 37, 5, 40, 48
    w1b, b1b, w2b = init_params(kp2, D2, H2)
    z2 = jax.random.normal(kz2, (N2, M2, D2), jnp.float32)

    out2 = jax.block_until_ready(
        component_attention(z2, w1b, b1b, w2b, tile_n=16, allow_fast_path=False))
    ref2 = component_attention_ref(z2, w1b, b1b, w2b)
    assert out2.shape == (N2, D2)
    assert jnp.allclose(out2, ref2, rtol=1e-4, atol=1e-4), (out2, ref2)

    # Config 1 with bf16 z: the kernel streams z in its native dtype and
    # converts in-kernel (f32 accumulation) -> looser tolerance.
    z_bf16 = z.astype(jnp.bfloat16)
    out_bf = jax.block_until_ready(component_attention(z_bf16, w1, b1, w2))
    ref_bf = component_attention_ref(z_bf16.astype(jnp.float32), w1, b1, w2)
    assert jnp.allclose(out_bf.astype(jnp.float32), ref_bf, rtol=2e-2, atol=2e-2)

    print("KERNEL_OK")
</pallas_src>

<mosaic_0001>
module attributes {stable_mosaic.version = 11 : i64} {
  func.func @_fused_kernel(%arg0: i32, %arg1: memref<2x4x16xf32, #tpu.memory_space<vmem>>, %arg2: memref<16x128xf32, #tpu.memory_space<vmem>>, %arg3: memref<1x128xf32, #tpu.memory_space<vmem>>, %arg4: memref<1x128xf32, #tpu.memory_space<vmem>>, %arg5: memref<2x16xf32, #tpu.memory_space<vmem>>) attributes {dimension_semantics = [#tpu.dimension_semantics<arbitrary>], iteration_bounds = array<i64: 1>, scalar_prefetch = 0 : i64, scratch_operands = 0 : i64, tpu.core_type = #tpu.core_type<tc>, window_params = [{pipeline_mode = #tpu.pipeline_mode<synchronous>, transform_indices = @transform_0, window_bounds = array<i64: 2, 4, 16>}, {pipeline_mode = #tpu.pipeline_mode<synchronous>, transform_indices = @transform_1, window_bounds = array<i64: 16, 128>}, {pipeline_mode = #tpu.pipeline_mode<synchronous>, transform_indices = @transform_2, window_bounds = array<i64: 1, 128>}, {pipeline_mode = #tpu.pipeline_mode<synchronous>, transform_indices = @transform_3, window_bounds = array<i64: 1, 128>}, {pipeline_mode = #tpu.pipeline_mode<synchronous>, transform_indices = @transform_4, window_bounds = array<i64: 2, 16>}]} {
    %c0 = arith.constant 0 : index
    %c0_0 = arith.constant 0 : index
    %0 = vector.load %arg2[%c0, %c0_0] : memref<16x128xf32, #tpu.memory_space<vmem>>, vector<16x128xf32>
    %c0_1 = arith.constant 0 : index
    %c0_2 = arith.constant 0 : index
    %1 = vector.load %arg3[%c0_1, %c0_2] : memref<1x128xf32, #tpu.memory_space<vmem>>, vector<1x128xf32>
    %c0_3 = arith.constant 0 : index
    %c0_4 = arith.constant 0 : index
    %2 = vector.load %arg4[%c0_3, %c0_4] : memref<1x128xf32, #tpu.memory_space<vmem>>, vector<1x128xf32>
    %c0_5 = arith.constant 0 : index
    %c0_6 = arith.constant 0 : index
    %c0_7 = arith.constant 0 : index
    %3 = vector.load %arg1[%c0_5, %c0_6, %c0_7] : memref<2x4x16xf32, #tpu.memory_space<vmem>>, vector<2x1x16xf32>
    %4 = vector.shape_cast %3 : vector<2x1x16xf32> to vector<2x16xf32>
    %cst = arith.constant dense<0.000000e+00> : vector<2x128xf32>
    %5 = tpu.matmul %4, %0, %cst {dimension_numbers = #tpu.dot_dimension_numbers<[1], [0], [0], [1], [0, 0, 1, 1], [], []>} : vector<2x16xf32>, vector<16x128xf32>, vector<2x128xf32> -> vector<2x128xf32>
    %6 = vector.broadcast %1 : vector<1x128xf32> to vector<2x128xf32>
    %7 = arith.addf %5, %6 : vector<2x128xf32>
    %8 = math.tanh %7 : vector<2x128xf32>
    %9 = vector.broadcast %2 : vector<1x128xf32> to vector<2x128xf32>
    %10 = arith.mulf %8, %9 : vector<2x128xf32>
    %cst_8 = arith.constant dense<0.000000e+00> : vector<2xf32>
    %11 = vector.multi_reduction <add>, %10, %cst_8 [1] : vector<2x128xf32> to vector<2xf32>
    %12 = vector.shape_cast %11 : vector<2xf32> to vector<2x1xf32>
    %cst_9 = arith.constant dense<0.000000e+00> : vector<1xf32>
    %13 = vector.multi_reduction <add>, %12, %cst_9 [0] : vector<2x1xf32> to vector<1xf32>
    %14 = vector.shape_cast %13 : vector<1xf32> to vector<1x1xf32>
    %cst_10 = arith.constant 5.000000e-01 : f32
    %15 = vector.broadcast %cst_10 : f32 to vector<1x1xf32>
    %16 = arith.mulf %14, %15 : vector<1x1xf32>
    %c0_11 = arith.constant 0 : index
    %c1 = arith.constant 1 : index
    %c0_12 = arith.constant 0 : index
    %17 = vector.load %arg1[%c0_11, %c1, %c0_12] : memref<2x4x16xf32, #tpu.memory_space<vmem>>, vector<2x1x16xf32>
    %18 = vector.shape_cast %17 : vector<2x1x16xf32> to vector<2x16xf32>
    %cst_13 = arith.constant dense<0.000000e+00> : vector<2x128xf32>
    %19 = tpu.matmul %18, %0, %cst_13 {dimension_numbers = #tpu.dot_dimension_numbers<[1], [0], [0], [1], [0, 0, 1, 1], [], []>} : vector<2x16xf32>, vector<16x128xf32>, vector<2x128xf32> -> vector<2x128xf32>
    %20 = vector.broadcast %1 : vector<1x128xf32> to vector<2x128xf32>
    %21 = arith.addf %19, %20 : vector<2x128xf32>
    %22 = math.tanh %21 : vector<2x128xf32>
    %23 = vector.broadcast %2 : vector<1x128xf32> to vector<2x128xf32>
    %24 = arith.mulf %22, %23 : vector<2x128xf32>
    %cst_14 = arith.constant dense<0.000000e+00> : vector<2xf32>
    %25 = vector.multi_reduction <add>, %24, %cst_14 [1] : vector<2x128xf32> to vector<2xf32>
    %26 = vector.shape_cast %25 : vector<2xf32> to vector<2x1xf32>
    %cst_15 = arith.constant dense<0.000000e+00> : vector<1xf32>
    %27 = vector.multi_reduction <add>, %26, %cst_15 [0] : vector<2x1xf32> to vector<1xf32>
    %28 = vector.shape_cast %27 : vector<1xf32> to vector<1x1xf32>
    %cst_16 = arith.constant 5.000000e-01 : f32
    %29 = vector.broadcast %cst_16 : f32 to vector<1x1xf32>
    %30 = arith.mulf %28, %29 : vector<1x1xf32>
    %c0_17 = arith.constant 0 : index
    %c2 = arith.constant 2 : index
    %c0_18 = arith.constant 0 : index
    %31 = vector.load %arg1[%c0_17, %c2, %c0_18] : memref<2x4x16xf32, #tpu.memory_space<vmem>>, vector<2x1x16xf32>
    %32 = vector.shape_cast %31 : vector<2x1x16xf32> to vector<2x16xf32>
    %cst_19 = arith.constant dense<0.000000e+00> : vector<2x128xf32>
    %33 = tpu.matmul %32, %0, %cst_19 {dimension_numbers = #tpu.dot_dimension_numbers<[1], [0], [0], [1], [0, 0, 1, 1], [], []>} : vector<2x16xf32>, vector<16x128xf32>, vector<2x128xf32> -> vector<2x128xf32>
    %34 = vector.broadcast %1 : vector<1x128xf32> to vector<2x128xf32>
    %35 = arith.addf %33, %34 : vector<2x128xf32>
    %36 = math.tanh %35 : vector<2x128xf32>
    %37 = vector.broadcast %2 : vector<1x128xf32> to vector<2x128xf32>
    %38 = arith.mulf %36, %37 : vector<2x128xf32>
    %cst_20 = arith.constant dense<0.000000e+00> : vector<2xf32>
    %39 = vector.multi_reduction <add>, %38, %cst_20 [1] : vector<2x128xf32> to vector<2xf32>
    %40 = vector.shape_cast %39 : vector<2xf32> to vector<2x1xf32>
    %cst_21 = arith.constant dense<0.000000e+00> : vector<1xf32>
    %41 = vector.multi_reduction <add>, %40, %cst_21 [0] : vector<2x1xf32> to vector<1xf32>
    %42 = vector.shape_cast %41 : vector<1xf32> to vector<1x1xf32>
    %cst_22 = arith.constant 5.000000e-01 : f32
    %43 = vector.broadcast %cst_22 : f32 to vector<1x1xf32>
    %44 = arith.mulf %42, %43 : vector<1x1xf32>
    %c0_23 = arith.constant 0 : index
    %c3 = arith.constant 3 : index
    %c0_24 = arith.constant 0 : index
    %45 = vector.load %arg1[%c0_23, %c3, %c0_24] : memref<2x4x16xf32, #tpu.memory_space<vmem>>, vector<2x1x16xf32>
    %46 = vector.shape_cast %45 : vector<2x1x16xf32> to vector<2x16xf32>
    %cst_25 = arith.constant dense<0.000000e+00> : vector<2x128xf32>
    %47 = tpu.matmul %46, %0, %cst_25 {dimension_numbers = #tpu.dot_dimension_numbers<[1], [0], [0], [1], [0, 0, 1, 1], [], []>} : vector<2x16xf32>, vector<16x128xf32>, vector<2x128xf32> -> vector<2x128xf32>
    %48 = vector.broadcast %1 : vector<1x128xf32> to vector<2x128xf32>
    %49 = arith.addf %47, %48 : vector<2x128xf32>
    %50 = math.tanh %49 : vector<2x128xf32>
    %51 = vector.broadcast %2 : vector<1x128xf32> to vector<2x128xf32>
    %52 = arith.mulf %50, %51 : vector<2x128xf32>
    %cst_26 = arith.constant dense<0.000000e+00> : vector<2xf32>
    %53 = vector.multi_reduction <add>, %52, %cst_26 [1] : vector<2x128xf32> to vector<2xf32>
    %54 = vector.shape_cast %53 : vector<2xf32> to vector<2x1xf32>
    %cst_27 = arith.constant dense<0.000000e+00> : vector<1xf32>
    %55 = vector.multi_reduction <add>, %54, %cst_27 [0] : vector<2x1xf32> to vector<1xf32>
    %56 = vector.shape_cast %55 : vector<1xf32> to vector<1x1xf32>
    %cst_28 = arith.constant 5.000000e-01 : f32
    %57 = vector.broadcast %cst_28 : f32 to vector<1x1xf32>
    %58 = arith.mulf %56, %57 : vector<1x1xf32>
    %59 = arith.maximumf %16, %30 : vector<1x1xf32>
    %60 = arith.maximumf %59, %44 : vector<1x1xf32>
    %61 = arith.maximumf %60, %58 : vector<1x1xf32>
    %62 = arith.subf %16, %61 : vector<1x1xf32>
    %63 = math.exp %62 : vector<1x1xf32>
    %64 = arith.subf %30, %61 : vector<1x1xf32>
    %65 = math.exp %64 : vector<1x1xf32>
    %66 = arith.subf %44, %61 : vector<1x1xf32>
    %67 = math.exp %66 : vector<1x1xf32>
    %68 = arith.subf %58, %61 : vector<1x1xf32>
    %69 = math.exp %68 : vector<1x1xf32>
    %70 = arith.addf %63, %65 : vector<1x1xf32>
    %71 = arith.addf %70, %67 : vector<1x1xf32>
    %72 = arith.addf %71, %69 : vector<1x1xf32>
    %cst_29 = arith.constant 1.000000e+00 : f32
    %73 = vector.broadcast %cst_29 : f32 to vector<1x1xf32>
    %74 = arith.divf %73, %72 : vector<1x1xf32>
    %c0_30 = arith.constant 0 : index
    %c0_31 = arith.constant 0 : index
    %c0_32 = arith.constant 0 : index
    %75 = vector.load %arg1[%c0_30, %c0_31, %c0_32] : memref<2x4x16xf32, #tpu.memory_space<vmem>>, vector<2x1x16xf32>
    %76 = vector.shape_cast %75 : vector<2x1x16xf32> to vector<2x16xf32>
    %77 = arith.mulf %63, %74 : vector<1x1xf32>
    %78 = vector.broadcast %77 : vector<1x1xf32> to vector<2x16xf32>
    %79 = arith.mulf %76, %78 : vector<2x16xf32>
    %c0_33 = arith.constant 0 : index
    %c1_34 = arith.constant 1 : index
    %c0_35 = arith.constant 0 : index
    %80 = vector.load %arg1[%c0_33, %c1_34, %c0_35] : memref<2x4x16xf32, #tpu.memory_space<vmem>>, vector<2x1x16xf32>
    %81 = vector.shape_cast %80 : vector<2x1x16xf32> to vector<2x16xf32>
    %82 = arith.mulf %65, %74 : vector<1x1xf32>
    %83 = vector.broadcast %82 : vector<1x1xf32> to vector<2x16xf32>
    %84 = arith.mulf %81, %83 : vector<2x16xf32>
    %85 = arith.addf %79, %84 : vector<2x16xf32>
    %c0_36 = arith.constant 0 : index
    %c2_37 = arith.constant 2 : index
    %c0_38 = arith.constant 0 : index
    %86 = vector.load %arg1[%c0_36, %c2_37, %c0_38] : memref<2x4x16xf32, #tpu.memory_space<vmem>>, vector<2x1x16xf32>
    %87 = vector.shape_cast %86 : vector<2x1x16xf32> to vector<2x16xf32>
    %88 = arith.mulf %67, %74 : vector<1x1xf32>
    %89 = vector.broadcast %88 : vector<1x1xf32> to vector<2x16xf32>
    %90 = arith.mulf %87, %89 : vector<2x16xf32>
    %91 = arith.addf %85, %90 : vector<2x16xf32>
    %c0_39 = arith.constant 0 : index
    %c3_40 = arith.constant 3 : index
    %c0_41 = arith.constant 0 : index
    %92 = vector.load %arg1[%c0_39, %c3_40, %c0_41] : memref<2x4x16xf32, #tpu.memory_space<vmem>>, vector<2x1x16xf32>
    %93 = vector.shape_cast %92 : vector<2x1x16xf32> to vector<2x16xf32>
    %94 = arith.mulf %69, %74 : vector<1x1xf32>
    %95 = vector.broadcast %94 : vector<1x1xf32> to vector<2x16xf32>
    %96 = arith.mulf %93, %95 : vector<2x16xf32>
    %97 = arith.addf %91, %96 : vector<2x16xf32>
    %c0_42 = arith.constant 0 : index
    %c0_43 = arith.constant 0 : index
    %98 = vector.load %arg5[%c0_42, %c0_43] : memref<2x16xf32, #tpu.memory_space<vmem>>, vector<2x16xf32>
    tpu.vector_store %arg5[%c0_42, %c0_43], %97 {strides = array<i32>} : memref<2x16xf32, #tpu.memory_space<vmem>>, vector<2x16xf32>,
    return
  }
  func.func @transform_0(%arg0: i32) -> (i32, i32, i32) {
    %c0_i32 = arith.constant 0 : i32
    %c0_i32_0 = arith.constant 0 : i32
    %c0_i32_1 = arith.constant 0 : i32
    %c0_i32_2 = arith.constant 0 : i32
    return %c0_i32, %c0_i32_0, %c0_i32_1 : i32, i32, i32
  }
  func.func @transform_1(%arg0: i32) -> (i32, i32) {
    %c0_i32 = arith.constant 0 : i32
    %c0_i32_0 = arith.constant 0 : i32
    %c0_i32_1 = arith.constant 0 : i32
    return %c0_i32, %c0_i32_0 : i32, i32
  }
  func.func @transform_2(%arg0: i32) -> (i32, i32) {
    %c0_i32 = arith.constant 0 : i32
    %c0_i32_0 = arith.constant 0 : i32
    %c0_i32_1 = arith.constant 0 : i32
    return %c0_i32, %c0_i32_0 : i32, i32
  }
  func.func @transform_3(%arg0: i32) -> (i32, i32) {
    %c0_i32 = arith.constant 0 : i32
    %c0_i32_0 = arith.constant 0 : i32
    %c0_i32_1 = arith.constant 0 : i32
    return %c0_i32, %c0_i32_0 : i32, i32
  }
  func.func @transform_4(%arg0: i32) -> (i32, i32) {
    %c0_i32 = arith.constant 0 : i32
    %c0_i32_0 = arith.constant 0 : i32
    %c0_i32_1 = arith.constant 0 : i32
    return %c0_i32, %c0_i32_0 : i32, i32
  }
}

</mosaic_0001>

<bundles_post_ra>
// kernel: tpu_custom_call.1
= control target key start
LH: loop header
LB: loop body
LE: loop exit
PB: predicated region body
PF: predicated region fallthrough
CT: control target
= control target key end

     0   :  { %9 = vsyncpa [#allocation3], 0  ;;  %s778_s0 = inlined_call_operand.hbm [shape: f32[2,4,16], index: 0, kind: input, shape index: {}]   ;;  %s779_s1 = inlined_call_operand.hbm [shape: f32[16,128], index: 1, kind: input, shape index: {}]   ;;  %s780_s2 = inlined_call_operand.vmem [shape: f32[1,128], index: 2, kind: input, shape index: {}]   ;;  %s781_s3 = inlined_call_operand.vmem [shape: f32[1,128], index: 3, kind: input, shape index: {}]   ;;  %s782_s4 = inlined_call_operand.hbm [shape: f32[2,16], index: 4, kind: output, shape index: {}]  }
   0x1   :  { %10 = vsyncpa [#allocation6], 0 }
   0x2   :  { %11 = vsyncpa [#allocation4], 0  ;;  %s648_s15 = smov [#allocation2]   ;;  %s576_s19 = scalar_lea.hbm %s778_s0, 128 }
   0x3   :  { %s17_s16 = sshll.u32 %s648_s15, 4  ;;  %p577_p0 = scmp.ne.s32.totalorder %s778_s0, %s576_s19  ;;  %s18_s16 = int_to_ptr.vmem [resolvable:$true] %s17_s16 }
   0x4   :  { %p580_p1 = scmp.lt.u32.totalorder %s576_s19, %s778_s0 }
   0x6   :  { %p582_p2 = pnand %p580_p1, %p577_p0 }
   0x8   :  { %585 = shalt.err (!%p582_p2)
}
   0x9   :  { %s586_s24 = scalar_lea.vmem %s18_s16, 128  ;;  %p591_p4 = scmp.lt.s32.totalorder %s18_s16, %s18_s16 }
   0xa   :  { %p587_p3 = scmp.ne.s32.totalorder %s18_s16, %s586_s24  ;;  %p592_p5 = scmp.lt.s32.totalorder %s586_s24, %s586_s24 }
   0xc   :  { %p593_p6 = por %p592_p5, %p591_p4 }
   0xe   :  { %p594_p7 = pnand %p593_p6, %p587_p3 }
  0x10   :  { %597 = shalt.err (!%p594_p7)
}
  0x11   :  { %s649_s25 = smov 64   ;;  %s650_s26 = smov 4  }
  0x12   :  { %23 = dma.hbm_to_vmem [thread:$0]  %s778_s0, 128, %s18_s16, [#allocation3], %s649_s25, %s649_s25, %s650_s26  }
  0x13   :  { %s651_s29 = smov [#allocation5]   ;;  %s598_s7 = scalar_lea.hbm %s779_s1, 256 }
  0x14   :  { %s29_s30 = sshll.u32 %s651_s29, 4  ;;  %p599_p8 = scmp.ne.s32.totalorder %s779_s1, %s598_s7  ;;  %s30_s30 = int_to_ptr.vmem [resolvable:$true] %s29_s30 }
  0x15   :  { %p602_p9 = scmp.lt.u32.totalorder %s598_s7, %s779_s1 }
  0x17   :  { %p604_p10 = pnand %p602_p9, %p599_p8 }
  0x19   :  { %607 = shalt.err (!%p604_p10)
}
  0x1a   :  { %s608_s12 = scalar_lea.vmem %s30_s30, 256  ;;  %p613_p12 = scmp.lt.s32.totalorder %s30_s30, %s30_s30 }
  0x1b   :  { %p609_p11 = scmp.ne.s32.totalorder %s30_s30, %s608_s12  ;;  %p614_p13 = scmp.lt.s32.totalorder %s608_s12, %s608_s12 }
  0x1d   :  { %p615_p0 = por %p614_p13, %p613_p12 }
  0x1f   :  { %p616_p1 = pnand %p615_p0, %p609_p11 }
  0x21   :  { %619 = shalt.err (!%p616_p1)
}
  0x22   :  { %s652_s0 = smov 128   ;;  %s653_s13 = smov 8  }
  0x23   :  { %35 = dma.hbm_to_vmem [thread:$0]  %s779_s1, 256, %s30_s30, [#allocation6], %s652_s0, %s652_s0, %s653_s13  }
  0x24   :  { %642 = dma.done.wait [#allocation3], 128  }
  0x25   :  { %643 = vsyncadd [#allocation3], 4294967168 }
  0x26   :  { %644 = dma.done.wait [#allocation6], 256  }
  0x27   :  { %645 = vsyncadd [#allocation6], 4294967040  ;;  %v654_v0 = vmov 0.0|0.0   ;;  %vm655_vm0 = vmmov 0   ;;  %v656_v1 = vmov 0.0   ;;  %v46_v2 = vld [vmem:[#allocation5] sm:$0xff] }
  0x28   :  { %536 = vmatprep.subr.bf16.mxu0 %v654_v0  ;;  %512 = vmatprep.mubr.msk.f32.mxu0 %vm655_vm0, %v656_v1  ;;  %v47_v3 = vld [vmem:[#allocation5 + $0x8] sm:$0xff]  ;;  %v709_v4 = vld [vmem:[#allocation2] sm:$0x1]  ;;  %vm61_vm1 = vcmask 1041409   ;;  %v711_v6 = vld [vmem:[#allocation2 + $0x4] sm:$0x1] }
  0x29   :  { %539 = vmatprep.subr.bf16.mxu1 %v654_v0  ;;  %519 = vmatprep.mubr.msk.f32.mxu1 %vm655_vm0, %v656_v1  ;;  %v537_v5 = vpack.c.bf16 %v47_v3, %v46_v2  ;;  %v713_v7 = vld [vmem:[#allocation2 + $0x1] sm:$0x1]  ;;  %v715_v8 = vld [vmem:[#allocation2 + $0x5] sm:$0x1]  ;;  %v60_v9 = vrot.slane %v711_v6, 7  ;;  %vm63_vm2 = vcmask 130048  }
  0x2a   :  { %v160_v10 = vrot.slane %v715_v8, 7  ;;  %v719_v11 = vld [vmem:[#allocation2 + $0x6] sm:$0x1]  ;;  %v722_v13 = vld [vmem:[#allocation2 + $0x7] sm:$0x1]  ;;  %vm144_vm3 = vcmask 1041408  }
  0x2b   :  { %538 = vmatpush3.bf16.msra.mxu0 %v537_v5  ;;  %541 = vmatpush3.bf16.msra.mxu1 %v537_v5  ;;  %v251_v12 = vrot.slane %v719_v11, 7  ;;  %v62_v14 = vsel %vm61_vm1, %v60_v9, %v709_v4  ;;  %v728_v16 = vld [vmem:[#allocation2 + $0x2] sm:$0x1]  ;;  %v342_v17 = vrot.slane %v722_v13, 7  ;;  %v731_v18 = vld [vmem:[#allocation2 + $0x3] sm:$0x1] }
  0x2c   :  { %542 = vmatprep.subr.bf16.mxu0 %v654_v0  ;;  %v161_v15 = vsel %vm61_vm1, %v160_v10, %v713_v7  ;;  %545 = vmatprep.subr.bf16.mxu1 %v654_v0  ;;  %v490_v21 = vld [vmem:[%s780_s2] ss:$0 sm:$0xff]  ;;  %s657_s2 = smov [#allocation7]   ;;  %vm472_vm4 = vcmask 123904  }
  0x2d   :  { %v252_v19 = vsel %vm61_vm1, %v251_v12, %v728_v16  ;;  %v343_v20 = vsel %vm61_vm1, %v342_v17, %v731_v18  ;;  %v492_v34 = vld [vmem:[%s781_s3] ss:$0 sm:$0xff]  ;;  %s480_s3 = sshll.u32 %s657_s2, 4  ;;  %s481_s3 = int_to_ptr.vmem [resolvable:$true] %s480_s3 }
  0x2e   :  { %513 = vmatmul.mubr.msk.f32.vlgmr.msra.gmra.mrb[0].mxu0 %vm63_vm2, %v62_v14  ;;  %520 = vmatmul.mubr.msk.f32.vlgmr.msra.gmra.mrb[0].mxu1 %vm63_vm2, %v161_v15  ;;  %s620_s19 = scalar_lea.vmem %s481_s3, 32  ;;  %p625_p3 = scmp.lt.s32.totalorder %s481_s3, %s481_s3 }
  0x2f   :  { %544 = vmatpush3.bf16.msra.mxu0 %v537_v5  ;;  %526 = vmatprep.mubr.msk.f32.mxu0 %vm655_vm0, %v656_v1  ;;  %p621_p2 = scmp.ne.s32.totalorder %s481_s3, %s620_s19  ;;  %p626_p4 = scmp.lt.s32.totalorder %s620_s19, %s620_s19 }
  0x30   :  { %547 = vmatpush3.bf16.msra.mxu1 %v537_v5  ;;  %533 = vmatprep.mubr.msk.f32.mxu1 %vm655_vm0, %v656_v1 }
  0x31   :  { %p627_p5 = por %p626_p4, %p625_p3 }
  0x32   :  { %527 = vmatmul.mubr.msk.f32.vlgmr.msra.gmra.mrb[2].mxu0 %vm63_vm2, %v252_v19 }
  0x33   :  { %534 = vmatmul.mubr.msk.f32.vlgmr.msra.gmra.mrb[2].mxu1 %vm63_vm2, %v343_v20  ;;  %p628_p6 = pnand %p627_p5, %p621_p2 }
 0x101   :  { %v132_v22 = vpop.f32.mrb[0].mxu0  ;;  %v230_v23 = vpop.f32.mrb[0].mxu1 }
 0x102   :  { %v133_v24 = vadd.f32 %v490_v21, %v132_v22  ;;  %v514_v25 = vpop.f32.mrb[1].mxu0  ;;  %v231_v26 = vadd.f32 %v490_v21, %v230_v23  ;;  %v521_v27 = vpop.f32.mrb[1].mxu1 }
 0x104   :  { %558 = vtanh.f32 %v133_v24 }
 0x105   :  { %560 = vtanh.f32 %v231_v26  ;;  %v321_v28 = vpop.f32.mrb[2].mxu0 }
 0x106   :  { %v322_v29 = vadd.f32 %v490_v21, %v321_v28  ;;  %v528_v30 = vpop.f32.mrb[3].mxu0  ;;  %v412_v31 = vpop.f32.mrb[2].mxu1 }
 0x107   :  { %v413_v32 = vadd.f32 %v490_v21, %v412_v31  ;;  %v535_v33 = vpop.f32.mrb[3].mxu1 }
 0x108   :  { %562 = vtanh.f32 %v322_v29 }
 0x109   :  { %564 = vtanh.f32 %v413_v32 }
 0x10e   :  { %v559_v35 = vpop.eup %558 }
 0x10f   :  { %v561_v36 = vpop.eup %560  ;;  %v143_v37 = vmul.f32 %v559_v35, %v492_v34 }
 0x110   :  { %v235_v38 = vmul.f32 %v561_v36, %v492_v34 }
 0x111   :  { %v145_v39 = vsel %vm144_vm3, %v143_v37, 0.0 }
 0x112   :  { %v563_v40 = vpop.eup %562  ;;  %146 = vadd.xlane.f32.xlu0 %v145_v39  ;;  %v236_v42 = vsel %vm144_vm3, %v235_v38, 0.0 }
 0x113   :  { %v565_v41 = vpop.eup %564  ;;  %v326_v43 = vmul.f32 %v563_v40, %v492_v34 }
 0x114   :  { %v417_v44 = vmul.f32 %v565_v41, %v492_v34 }
 0x115   :  { %v327_v45 = vsel %vm144_vm3, %v326_v43, 0.0 }
 0x116   :  { %237 = vadd.xlane.f32.xlu0 %v236_v42  ;;  %328 = vadd.xlane.f32.xlu1 %v327_v45  ;;  %v418_v46 = vsel %vm144_vm3, %v417_v44, 0.0 }
 0x11a   :  { %419 = vadd.xlane.f32.xlu1 %v418_v46 }
 0x19f   :  { %v147_v47 = vpop.xlane.xlu0 %146 }
 0x1a0   :  { %v148_v48 = vsel %vm144_vm3, %v147_v47, 0.0 }
 0x1a1   :  { %v149_v49 = vrot.slane %v148_v48, 4 }
 0x1a3   :  { %v150_v50 = vadd.f32 %v149_v49, %v148_v48  ;;  %v238_v51 = vpop.xlane.xlu0 %237  ;;  %v329_v52 = vpop.xlane.xlu1 %328 }
 0x1a4   :  { %v239_v53 = vsel %vm144_vm3, %v238_v51, 0.0  ;;  %v330_v54 = vsel %vm144_vm3, %v329_v52, 0.0 }
 0x1a5   :  { %v151_v55 = vrot.slane %v150_v50, 2  ;;  %v240_v56 = vrot.slane %v239_v53, 4  ;;  %v331_v57 = vrot.slane %v330_v54, 4 }
 0x1a7   :  { %v152_v58 = vadd.f32 %v151_v55, %v150_v50  ;;  %v241_v59 = vadd.f32 %v240_v56, %v239_v53  ;;  %v332_v60 = vadd.f32 %v331_v57, %v330_v54  ;;  %v420_v61 = vpop.xlane.xlu1 %419 }
 0x1a8   :  { %v421_v62 = vsel %vm144_vm3, %v420_v61, 0.0 }
 0x1a9   :  { %v153_v63 = vrot.slane %v152_v58, 1  ;;  %v242_v0 = vrot.slane %v241_v59, 2  ;;  %v333_v1 = vrot.slane %v332_v60, 2  ;;  %v422_v2 = vrot.slane %v421_v62, 4 }
 0x1ab   :  { %v243_v3 = vadd.f32 %v242_v0, %v241_v59  ;;  %v334_v5 = vadd.f32 %v333_v1, %v332_v60  ;;  %v423_v9 = vadd.f32 %v422_v2, %v421_v62  ;;  %v154_v10 = vadd.f32 %v153_v63, %v152_v58 }
 0x1ad   :  { %v244_v12 = vrot.slane %v243_v3, 1  ;;  %v335_v14 = vrot.slane %v334_v5, 1  ;;  %v424_v15 = vrot.slane %v423_v9, 2  ;;  %v155_v21 = vmul.f32 0.5, %v154_v10 }
 0x1af   :  { %v245_v17 = vadd.f32 %v244_v12, %v243_v3  ;;  %v336_v19 = vadd.f32 %v335_v14, %v334_v5  ;;  %v425_v20 = vadd.f32 %v424_v15, %v423_v9 }
 0x1b1   :  { %v246_v22 = vmul.f32 0.5, %v245_v17  ;;  %v426_v23 = vrot.slane %v425_v20, 1  ;;  %v337_v25 = vmul.f32 0.5, %v336_v19 }
 0x1b3   :  { %v429_v24 = vmax.f32 %v155_v21, %v246_v22  ;;  %v427_v26 = vadd.f32 %v426_v23, %v425_v20 }
 0x1b5   :  { %v430_v27 = vmax.f32 %v429_v24, %v337_v25  ;;  %v428_v28 = vmul.f32 0.5, %v427_v26 }
 0x1b7   :  { %v431_v29 = vmax.f32 %v430_v27, %v428_v28 }
 0x1b9   :  { %v432_v30 = vsub.f32 %v155_v21, %v431_v29  ;;  %v435_v31 = vsub.f32 %v246_v22, %v431_v29  ;;  %v438_v32 = vsub.f32 %v337_v25, %v431_v29  ;;  %v441_v33 = vsub.f32 %v428_v28, %v431_v29 }
 0x1bb   :  { %v433_v34 = vmul.f32 1.442695, %v432_v30  ;;  %v436_v35 = vmul.f32 1.442695, %v435_v31  ;;  %v439_v36 = vmul.f32 1.442695, %v438_v32 }
 0x1bc   :  { %v442_v37 = vmul.f32 1.442695, %v441_v33 }
 0x1bd   :  { %566 = vpow2.f32 %v433_v34 }
 0x1be   :  { %568 = vpow2.f32 %v436_v35 }
 0x1bf   :  { %570 = vpow2.f32 %v439_v36 }
 0x1c0   :  { %572 = vpow2.f32 %v442_v37 }
 0x1c7   :  { %v567_v38 = vpop.eup %566 }
 0x1c8   :  { %v569_v39 = vpop.eup %568 }
 0x1c9   :  { %v444_v40 = vadd.f32 %v569_v39, %v567_v38  ;;  %v571_v41 = vpop.eup %570 }
 0x1ca   :  { %v573_v43 = vpop.eup %572 }
 0x1cb   :  { %v445_v42 = vadd.f32 %v571_v41, %v444_v40 }
 0x1cd   :  { %v446_v44 = vadd.f32 %v573_v43, %v445_v42 }
 0x1cf   :  { %574 = vrcp.f32 %v446_v44 }
 0x1d9   :  { %v575_v45 = vpop.eup %574 }
 0x1da   :  { %v449_v46 = vmul.f32 %v575_v45, %v567_v38  ;;  %v452_v47 = vmul.f32 %v575_v45, %v569_v39  ;;  %v457_v48 = vmul.f32 %v575_v45, %v571_v41  ;;  %v462_v49 = vmul.f32 %v575_v45, %v573_v43 }
 0x1dc   :  { %v450_v50 = vmul.f32 %v449_v46, %v709_v4  ;;  %v451_v51 = vmul.f32 %v449_v46, %v711_v6  ;;  %v453_v52 = vmul.f32 %v452_v47, %v713_v7  ;;  %v454_v53 = vmul.f32 %v452_v47, %v715_v8 }
 0x1dd   :  { %v458_v56 = vmul.f32 %v457_v48, %v728_v16  ;;  %v459_v57 = vmul.f32 %v457_v48, %v719_v11  ;;  %v464_v60 = vmul.f32 %v462_v49, %v722_v13  ;;  %v463_v61 = vmul.f32 %v462_v49, %v731_v18 }
 0x1de   :  { %v455_v54 = vadd.f32 %v453_v52, %v450_v50  ;;  %v456_v55 = vadd.f32 %v454_v53, %v451_v51 }
 0x1e0   :  { %v460_v58 = vadd.f32 %v458_v56, %v455_v54  ;;  %v461_v59 = vadd.f32 %v459_v57, %v456_v55 }
 0x1e2   :  { %v466_v62 = vadd.f32 %v464_v60, %v461_v59  ;;  %v465_v4 = vadd.f32 %v463_v61, %v460_v58 }
 0x1e4   :  { %v469_v6 = vrot.slane %v466_v62, 7 }
 0x1e6   :  { %v470_v7 = vsel %vm61_vm1, %v469_v6, %v465_v4 }
 0x1e7   :  { %473 = vst.msk [vmem:[#allocation7] sm:$0x3] %vm472_vm4, %v470_v7 }
 0x1e8   :  { %631 = shalt.err (!%p628_p6)
}
 0x1e9   :  { %s632_s22 = scalar_lea.hbm %s782_s4, 32 }
 0x1ea   :  { %p633_p7 = scmp.ne.s32.totalorder %s782_s4, %s632_s22  ;;  %p636_p8 = scmp.lt.u32.totalorder %s632_s22, %s782_s4 }
 0x1ec   :  { %p638_p9 = pnand %p636_p8, %p633_p7 }
 0x1ee   :  { %641 = shalt.err (!%p638_p9)
}
 0x1ef   :  { %483 = dma.vmem_to_hbm [thread:$0]  %s481_s3, 32, %s782_s4, [#allocation4]  }
 0x1f0   :  { %646 = dma.done.wait [#allocation4], 32  }
 0x1f1   :  { %647 = vsyncadd [#allocation4], 4294967264 }
 0x1f2   :  { %487 = vsyncpa [#allocation3], 1 }
 0x1f3   :  { %488 = vsyncpa [#allocation6], 1 }
 0x1f4   :  { %489 = vsyncpa [#allocation4], 1 }

</bundles_post_ra>
